<compile_context>
chip_gen: v6e
topology: v6e:2x2x1
jax: 0.10.0
libtpu: 0.0.40
codegen_flags: <defaults>
</compile_context>

<pallas_src>
import jax
import jax.numpy as jnp
from jax import lax
from jax.experimental import pallas as pl
from jax.experimental.pallas import tpu as pltpu

_MIN_LANE = 128          # TPU lane width
_ROW_MULT = 16           # legal sublane multiple for both f32 (8) and bf16 (16)
_BLOCK_BYTES_F32 = 1 << 20   # ~1 MiB f32 compute footprint per block


def _round_up(v: int, m: int) -> int:
    return ((v + m - 1) // m) * m


def _erf_kernel(x_ref, o_ref):
    x = x_ref[...]
    # Compute in f32 (v5e has no bf16 VPU path; torch.erf evaluates half inputs
    # in f32), cast back on store so HBM traffic stays at the input width.
    if x.dtype != jnp.float32:
        x = x.astype(jnp.float32)
    o_ref[...] = lax.erf(x).astype(o_ref.dtype)


def erf_pallas(x: jax.Array, *, target_grid_steps: int = 8) -> jax.Array:
    """Elementwise erf via a Pallas TPU kernel. Matches torch.erf(x) semantics."""
    orig_shape = x.shape
    orig_dtype = x.dtype
    n = x.size
    if n == 0:
        return x

    x_flat = jnp.ravel(x)  # contiguous -> free metadata reshape

    # ---- choose lane width (last dim of the slab) -------------------------
    # Wider lane-dense slabs give larger unmasked vst streams; 128 is the floor.
    lane = None
    for cand in (1024, 512, 256, _MIN_LANE):
        if n % cand == 0:
            lane = cand
            break

    pad = 0
    if lane is None:
        # Rare path: n is not a multiple of 128. Pad only up to the lane
        # boundary (<=127 elements). TODO(synk): the pad + final slice add one
        # extra HBM round trip of the tensor; a masked-tail kernel would avoid
        # it, but typical NCHW sizes never take this branch.
        lane = _MIN_LANE
        pad = (-n) % _MIN_LANE
        x_flat = jnp.pad(x_flat, (0, pad))

    rows = (n + pad) // lane
    x2d = x_flat.reshape(rows, lane)

    # ---- choose block_rows so the grid keeps >= ~target_grid_steps steps ---
    # (single-step grids have no software pipeline and idle one v7x TC).
    itemsize = jnp.dtype(orig_dtype).itemsize
    max_block_rows = max(_ROW_MULT,
                         (_BLOCK_BYTES_F32 // (lane * 4)) // _ROW_MULT * _ROW_MULT)
    if rows <= _ROW_MULT:
        block_rows = rows                      # truly tiny: one full block
    else:
        block_rows = _round_up(pl.cdiv(rows, target_grid_steps), _ROW_MULT)
        block_rows = min(block_rows, max_block_rows)
    grid = (pl.cdiv(rows, block_rows),)        # ragged final block is masked

    cost = pl.CostEstimate(
        flops=25 * n,            # ~polynomial eval per element (VALU)
        transcendentals=0,       # lax.erf lowers to a VALU polynomial, not EUP
        bytes_accessed=2 * n * itemsize,
    )

    out2d = pl.pallas_call(
        _erf_kernel,
        out_shape=jax.ShapeDtypeStruct((rows, lane), orig_dtype),
        grid_spec=pltpu.PrefetchScalarGridSpec(
            num_scalar_prefetch=0,
            grid=grid,
            in_specs=[pl.BlockSpec((block_rows, lane), lambda i: (i, 0))],
            out_specs=pl.BlockSpec((block_rows, lane), lambda i: (i, 0)),
        ),
        compiler_params=pltpu.CompilerParams(
            dimension_semantics=("parallel",),   # shard steps across v7x's 2 TCs
        ),
        cost_estimate=cost,
    )(x2d)

    out_flat = out2d.reshape(-1)
    if pad:
        out_flat = out_flat[:n]
    return out_flat.reshape(orig_shape)


if __name__ == "__main__":
    key = jax.random.PRNGKey(0)

    # Small NCHW input consistent with the module's expected usage.
    x = jax.random.normal(key, (2, 4, 16, 16), dtype=jnp.float32) * 2.0
    y = erf_pallas(x)
    jax.block_until_ready(y)
    y_ref = lax.erf(x)
    assert y.shape == x.shape and y.dtype == x.dtype
    assert jnp.max(jnp.abs(y - y_ref)) < 1e-6

    # Exercise the multi-step pipelined grid + wide-lane path.
    x2 = jax.random.normal(jax.random.PRNGKey(1), (4, 8, 32, 32), dtype=jnp.float32)
    y2 = erf_pallas(x2)
    jax.block_until_ready(y2)
    assert jnp.max(jnp.abs(y2 - lax.erf(x2))) < 1e-6

    # Exercise the rare non-multiple-of-128 fallback path.
    x3 = jax.random.normal(jax.random.PRNGKey(2), (3, 5, 7), dtype=jnp.float32)
    y3 = erf_pallas(x3)
    jax.block_until_ready(y3)
    assert jnp.max(jnp.abs(y3 - lax.erf(x3))) < 1e-6

    print("KERNEL_OK")
</pallas_src>

<mosaic_0001>
module attributes {stable_mosaic.version = 11 : i64} {
  func.func @_erf_kernel(%arg0: i32, %arg1: memref<2x1024xf32, #tpu.memory_space<vmem>>, %arg2: memref<2x1024xf32, #tpu.memory_space<vmem>>) attributes {dimension_semantics = [#tpu.dimension_semantics<parallel>], iteration_bounds = array<i64: 1>, scalar_prefetch = 0 : i64, scratch_operands = 0 : i64, tpu.core_type = #tpu.core_type<tc>, window_params = [{transform_indices = @transform_0, window_bounds = array<i64: 2, 1024>}, {transform_indices = @transform_1, window_bounds = array<i64: 2, 1024>}]} {
    %c0 = arith.constant 0 : index
    %c0_0 = arith.constant 0 : index
    %0 = vector.load %arg1[%c0, %c0_0] : memref<2x1024xf32, #tpu.memory_space<vmem>>, vector<2x1024xf32>
    %1 = math.erf %0 : vector<2x1024xf32>
    %c0_1 = arith.constant 0 : index
    %c0_2 = arith.constant 0 : index
    %2 = vector.load %arg2[%c0_1, %c0_2] : memref<2x1024xf32, #tpu.memory_space<vmem>>, vector<2x1024xf32>
    tpu.vector_store %arg2[%c0_1, %c0_2], %1 {strides = array<i32>} : memref<2x1024xf32, #tpu.memory_space<vmem>>, vector<2x1024xf32>,
    return
  }
  func.func @transform_0(%arg0: i32) -> (i32, i32) {
    %c0_i32 = arith.constant 0 : i32
    %c0_i32_0 = arith.constant 0 : i32
    return %arg0, %c0_i32 : i32, i32
  }
  func.func @transform_1(%arg0: i32) -> (i32, i32) {
    %c0_i32 = arith.constant 0 : i32
    %c0_i32_0 = arith.constant 0 : i32
    return %arg0, %c0_i32 : i32, i32
  }
}

</mosaic_0001>

<bundles_post_ra>
// kernel: tpu_custom_call.1
= control target key start
LH: loop header
LB: loop body
LE: loop exit
PB: predicated region body
PF: predicated region fallthrough
CT: control target
= control target key end

     0   :  { %6 = vsyncpa [#allocation3], 0  ;;  %s110_s0 = inlined_call_operand.hbm [shape: f32[2,1024], index: 0, kind: input, shape index: {}]   ;;  %s111_s1 = inlined_call_operand.hbm [shape: f32[2,1024], index: 1, kind: output, shape index: {}]  }
   0x1   :  { %7 = vsyncpa [#allocation4], 0  ;;  %s92_s6 = smov [#allocation2]  }
   0x2   :  { %s14_s7 = sshll.u32 %s92_s6, 4  ;;  %s15_s7 = int_to_ptr.vmem [resolvable:$true] %s14_s7 }
   0x3   :  { %s56_s8 = scalar_lea.vmem %s15_s7, 256  ;;  %p61_p1 = scmp.lt.s32.totalorder %s15_s7, %s15_s7 }
   0x4   :  { %p57_p0 = scmp.ne.s32.totalorder %s15_s7, %s56_s8  ;;  %p62_p2 = scmp.lt.s32.totalorder %s56_s8, %s56_s8 }
   0x6   :  { %p63_p3 = por %p62_p2, %p61_p1 }
   0x8   :  { %p64_p4 = pnand %p63_p3, %p57_p0 }
   0xa   :  { %67 = shalt.err (!%p64_p4)
}
   0xb   :  { %17 = dma.hbm_to_vmem [thread:$0]  %s110_s0, 256, %s15_s7, [#allocation3]  }
   0xc   :  { %88 = dma.done.wait [#allocation3], 256  }
   0xd   :  { %89 = vsyncadd [#allocation3], 4294967040  ;;  %v21_v0 = vld [vmem:[#allocation2] sm:$0xff]  ;;  %v22_v1 = vld [vmem:[#allocation2 + $0x8] sm:$0xff]  ;;  %s93_s11 = smov [#allocation5]  }
   0xe   :  { %44 = verf.f32 %v21_v0  ;;  %s33_s12 = sshll.u32 %s93_s11, 4  ;;  %s34_s12 = int_to_ptr.vmem [resolvable:$true] %s33_s12 }
   0xf   :  { %46 = verf.f32 %v22_v1  ;;  %s68_s13 = scalar_lea.vmem %s34_s12, 256  ;;  %p73_p6 = scmp.lt.s32.totalorder %s34_s12, %s34_s12 }
  0x10   :  { %p69_p5 = scmp.ne.s32.totalorder %s34_s12, %s68_s13  ;;  %p74_p7 = scmp.lt.s32.totalorder %s68_s13, %s68_s13 }
  0x12   :  { %p75_p8 = por %p74_p7, %p73_p6 }
  0x14   :  { %p76_p9 = pnand %p75_p8, %p69_p5 }
  0x1b   :  { %v45_v2 = vpop.eup %44 }
  0x1c   :  { %v47_v3 = vpop.eup %46  ;;  %25 = vst [vmem:[#allocation5] sm:$0xff] %v45_v2 }
  0x1d   :  { %26 = vst [vmem:[#allocation5 + $0x8] sm:$0xff] %v47_v3 }
  0x1e   :  { %79 = shalt.err (!%p76_p9)
}
  0x1f   :  { %36 = dma.vmem_to_hbm [thread:$0]  %s34_s12, 256, %s111_s1, [#allocation4]  }
  0x20   :  { %90 = dma.done.wait [#allocation4], 256  }
  0x21   :  { %91 = vsyncadd [#allocation4], 4294967040 }
  0x22   :  { %40 = vsyncpa [#allocation3], 1 }
  0x23   :  { %41 = vsyncpa [#allocation4], 1 }

</bundles_post_ra>
